<compile_context>
chip_gen: v5e
topology: v5e:2x2
jax: 0.10.0
libtpu: 0.0.40
codegen_flags: <defaults>
</compile_context>

<pallas_src>
import inspect

import jax
import jax.numpy as jnp
from jax.experimental import pallas as pl
from jax.experimental.pallas import tpu as pltpu


# --------------------------------------------------------------------------- #
# Kernel
# --------------------------------------------------------------------------- #
def _mlp_kernel(x_ref, w1_ref, b1_ref, w2_ref, b2_ref, o_ref):
    # x_ref : (TM, H)   w1_ref/w2_ref : (H, H)   b1_ref/b2_ref : (1, H)
    x = x_ref[...]
    # Linear 1 (MXU, f32 accumulation) + bias + ReLU (VPU, f32)
    h = jnp.dot(x, w1_ref[...], preferred_element_type=jnp.float32)
    h = jnp.maximum(h + b1_ref[...].astype(jnp.float32), 0.0)
    # Linear 2 (cast intermediate back to the matmul dtype for the MXU)
    y = jnp.dot(h.astype(w2_ref.dtype), w2_ref[...],
                preferred_element_type=jnp.float32)
    y = y + b2_ref[...].astype(jnp.float32)
    o_ref[...] = y.astype(o_ref.dtype)


# --------------------------------------------------------------------------- #
# Hardware / feature queries
# --------------------------------------------------------------------------- #
def _vmem_capacity_bytes():
    """Per-core VMEM capacity (128 MiB v5e/v6e, 64 MiB v7x); conservative fallback."""
    if hasattr(pltpu, "get_tpu_info"):
        try:
            cap = getattr(pltpu.get_tpu_info(), "vmem_capacity_bytes", None)
            if cap:
                return int(cap)
        except Exception:  # hardware query only; never affects numerics
            pass
    return 64 << 20


def _num_tensorcores_per_chip():
    """2 TensorCores on v7x, 1 on v5e/v6e. Conservative default: 1."""
    try:
        kind = jax.devices()[0].device_kind.lower()
    except Exception:
        return 1
    return 2 if ("v7" in kind or "7x" in kind) else 1


def _pipeline_mode_supported():
    """Explicit feature check for BlockSpec(pipeline_mode=pl.Buffered(n))."""
    if not hasattr(pl, "Buffered"):
        return False
    try:
        return "pipeline_mode" in inspect.signature(pl.BlockSpec).parameters
    except (TypeError, ValueError):
        return False


def _tile_bytes(rows, cols, itemsize):
    """Rough VMEM footprint of one (rows, cols) tile, rounded to (8,128) granules."""
    rr = -(-rows // 8) * 8
    cc = -(-cols // 128) * 128
    return rr * cc * itemsize


# --------------------------------------------------------------------------- #
# Wrapper
# --------------------------------------------------------------------------- #
def mlp_pallas(x, w1, b1, w2, b2, *, tile_m=1024, compute_dtype=None,
               single_buffer_weights=True):
    """x: (..., H) -> (..., H). Fused Linear->ReLU->Linear.

    Weights are stored as (in, out) so the kernel computes x @ W + b
    (equivalent to PyTorch's x @ W.T + b with W stored (out, in)).
    compute_dtype=jnp.bfloat16 enables the bf16 MXU path (f32 accumulation).
    """
    orig_shape = x.shape
    H = orig_shape[-1]
    x2d = x.reshape(-1, H)
    M = x2d.shape[0]
    out_dtype = x.dtype

    # Optional bf16 matmul path; biases stay f32 (added to f32 accumulators).
    if compute_dtype is not None:
        x2d = x2d.astype(compute_dtype)
        w1 = w1.astype(compute_dtype)
        w2 = w2.astype(compute_dtype)
    b1_2d = b1.reshape(1, H).astype(jnp.float32)
    b2_2d = b2.reshape(1, H).astype(jnp.float32)

    xsz = jnp.dtype(x2d.dtype).itemsize
    wsz = jnp.dtype(w1.dtype).itemsize
    osz = jnp.dtype(out_dtype).itemsize
    min_tm = 16 if xsz < 4 else 8        # bf16 packs 16 sublanes per vreg

    # ---- row tiling: unpadded rows, ragged final block is masked by Pallas --
    num_tc = _num_tensorcores_per_chip()
    if M > tile_m:
        tm = max(min_tm, (tile_m // min_tm) * min_tm)
    elif num_tc > 1 and M > min_tm * num_tc:
        # split small workloads so both v7x TensorCores get a row block
        per = -(-M // num_tc)
        tm = -(-per // min_tm) * min_tm
    else:
        tm = M                            # single block == full extent (exempt)

    # ---- per-chip VMEM budget + explicit resident-weight guard --------------
    pipeline_ok = single_buffer_weights and _pipeline_mode_supported()
    wbuf = 1 if pipeline_ok else 2
    weight_bytes = wbuf * (2 * _tile_bytes(H, H, wsz) + 2 * _tile_bytes(1, H, 4))
    cap = _vmem_capacity_bytes()
    budget = cap - (2 << 20)

    def _io_bytes(tm_):
        return (2 * (_tile_bytes(tm_, H, xsz) + _tile_bytes(tm_, H, osz))   # dbl-buffered x / out
                + 2 * _tile_bytes(tm_, H, 4))                               # f32 intermediates

    # Shrink the row tile before relying on a VMEM OOM to fail.
    while tm > min_tm and weight_bytes + _io_bytes(tm) > budget:
        tm = max(min_tm, (-(-(tm // 2) // min_tm)) * min_tm)
    if weight_bytes + _io_bytes(tm) > budget:
        # TODO(synk): add an N-tiled (column-tiled w1/w2 + h scratch) or
        # bf16-weight fallback for hidden sizes whose resident weights exceed
        # per-core VMEM (v7x: 64 MiB).
        raise ValueError(
            f"Resident-weight MLP kernel needs ~{weight_bytes + _io_bytes(tm)} B VMEM "
            f"but only {budget} B available (H={H}); use bf16 weights or an N-tiled path.")

    grid_m = pl.cdiv(M, tm)
    needed = weight_bytes + _io_bytes(tm)
    vmem_limit = int(min(max(needed * 5 // 4 + (4 << 20), 32 << 20), budget))

    # ---- cost estimate with real (unpadded) sizes ---------------------------
    cost = pl.CostEstimate(
        flops=4 * M * H * H,                       # two (M,H)x(H,H) matmuls
        transcendentals=0,
        bytes_accessed=(M * H * (xsz + osz)        # x in, y out
                        + 2 * H * H * wsz          # weights
                        + 2 * H * 4),              # biases
    )

    wkw = {"pipeline_mode": pl.Buffered(1)} if pipeline_ok else {}
    in_specs = [
        pl.BlockSpec((tm, H), lambda i: (i, 0)),          # x rows (streamed)
        pl.BlockSpec((H, H), lambda i: (0, 0), **wkw),    # w1 (resident)
        pl.BlockSpec((1, H), lambda i: (0, 0), **wkw),    # b1 (resident)
        pl.BlockSpec((H, H), lambda i: (0, 0), **wkw),    # w2 (resident)
        pl.BlockSpec((1, H), lambda i: (0, 0), **wkw),    # b2 (resident)
    ]

    out = pl.pallas_call(
        _mlp_kernel,
        out_shape=jax.ShapeDtypeStruct((M, H), out_dtype),
        grid_spec=pltpu.PrefetchScalarGridSpec(
            num_scalar_prefetch=0,
            grid=(grid_m,),
            in_specs=in_specs,
            out_specs=pl.BlockSpec((tm, H), lambda i: (i, 0)),
        ),
        compiler_params=pltpu.CompilerParams(
            dimension_semantics=("parallel",),
            vmem_limit_bytes=vmem_limit),
        cost_estimate=cost,
    )(x2d, w1, b1_2d, w2, b2_2d)

    return out.reshape(orig_shape)


def mlp_reference(x, w1, b1, w2, b2):
    h = jnp.maximum(x @ w1 + b1, 0.0)
    return h @ w2 + b2


if __name__ == "__main__":
    key = jax.random.PRNGKey(0)
    B, S, H = 2, 8, 32  # batch, seq (e.g. num slots), hidden_channels

    kx, k1, k2, k3, k4 = jax.random.split(key, 5)
    x = jax.random.normal(kx, (B, S, H), dtype=jnp.float32)

    # Deterministic synthetic parameters (PyTorch Linear: W (out,in), b (out,)),
    # stored here directly as (in, out) for x @ W + b.
    bound = 1.0 / jnp.sqrt(H)
    w1 = jax.random.uniform(k1, (H, H), minval=-bound, maxval=bound, dtype=jnp.float32)
    b1 = jax.random.uniform(k2, (H,), minval=-bound, maxval=bound, dtype=jnp.float32)
    w2 = jax.random.uniform(k3, (H, H), minval=-bound, maxval=bound, dtype=jnp.float32)
    b2 = jax.random.uniform(k4, (H,), minval=-bound, maxval=bound, dtype=jnp.float32)

    ref = mlp_reference(x, w1, b1, w2, b2)

    # f32 path (matches the PyTorch reference bit-for-bit within tolerance)
    out = mlp_pallas(x, w1, b1, w2, b2)
    out = jax.block_until_ready(out)
    assert out.shape == (B, S, H), out.shape
    assert jnp.allclose(out, ref, atol=1e-5, rtol=1e-5), \
        float(jnp.max(jnp.abs(out - ref)))

    # bf16 MXU path (f32 accumulation); loose tolerance for the downcast.
    out_bf16 = mlp_pallas(x, w1, b1, w2, b2, compute_dtype=jnp.bfloat16)
    out_bf16 = jax.block_until_ready(out_bf16)
    assert out_bf16.shape == (B, S, H), out_bf16.shape
    assert jnp.allclose(out_bf16, ref, atol=5e-2, rtol=5e-2), \
        float(jnp.max(jnp.abs(out_bf16 - ref)))

    print("KERNEL_OK")
</pallas_src>

<mosaic_0001>
module attributes {stable_mosaic.version = 11 : i64} {
  func.func @_mlp_kernel(%arg0: i32, %arg1: memref<16x32xf32, #tpu.memory_space<vmem>>, %arg2: memref<32x32xf32, #tpu.memory_space<vmem>>, %arg3: memref<1x32xf32, #tpu.memory_space<vmem>>, %arg4: memref<32x32xf32, #tpu.memory_space<vmem>>, %arg5: memref<1x32xf32, #tpu.memory_space<vmem>>, %arg6: memref<16x32xf32, #tpu.memory_space<vmem>>) attributes {dimension_semantics = [#tpu.dimension_semantics<parallel>], iteration_bounds = array<i64: 1>, scalar_prefetch = 0 : i64, scratch_operands = 0 : i64, tpu.core_type = #tpu.core_type<tc>, window_params = [{transform_indices = @transform_0, window_bounds = array<i64: 16, 32>}, {pipeline_mode = #tpu.pipeline_mode<synchronous>, transform_indices = @transform_1, window_bounds = array<i64: 32, 32>}, {pipeline_mode = #tpu.pipeline_mode<synchronous>, transform_indices = @transform_2, window_bounds = array<i64: 1, 32>}, {pipeline_mode = #tpu.pipeline_mode<synchronous>, transform_indices = @transform_3, window_bounds = array<i64: 32, 32>}, {pipeline_mode = #tpu.pipeline_mode<synchronous>, transform_indices = @transform_4, window_bounds = array<i64: 1, 32>}, {transform_indices = @transform_5, window_bounds = array<i64: 16, 32>}]} {
    %c0 = arith.constant 0 : index
    %c0_0 = arith.constant 0 : index
    %0 = vector.load %arg1[%c0, %c0_0] : memref<16x32xf32, #tpu.memory_space<vmem>>, vector<16x32xf32>
    %c0_1 = arith.constant 0 : index
    %c0_2 = arith.constant 0 : index
    %1 = vector.load %arg2[%c0_1, %c0_2] : memref<32x32xf32, #tpu.memory_space<vmem>>, vector<32x32xf32>
    %cst = arith.constant dense<0.000000e+00> : vector<16x32xf32>
    %2 = tpu.matmul %0, %1, %cst {dimension_numbers = #tpu.dot_dimension_numbers<[1], [0], [0], [1], [0, 0, 1, 1], [], []>} : vector<16x32xf32>, vector<32x32xf32>, vector<16x32xf32> -> vector<16x32xf32>
    %c0_3 = arith.constant 0 : index
    %c0_4 = arith.constant 0 : index
    %3 = vector.load %arg3[%c0_3, %c0_4] : memref<1x32xf32, #tpu.memory_space<vmem>>, vector<1x32xf32>
    %4 = vector.broadcast %3 : vector<1x32xf32> to vector<16x32xf32>
    %5 = arith.addf %2, %4 : vector<16x32xf32>
    %cst_5 = arith.constant 0.000000e+00 : f32
    %6 = vector.broadcast %cst_5 : f32 to vector<16x32xf32>
    %7 = arith.maximumf %5, %6 : vector<16x32xf32>
    %c0_6 = arith.constant 0 : index
    %c0_7 = arith.constant 0 : index
    %8 = vector.load %arg4[%c0_6, %c0_7] : memref<32x32xf32, #tpu.memory_space<vmem>>, vector<32x32xf32>
    %cst_8 = arith.constant dense<0.000000e+00> : vector<16x32xf32>
    %9 = tpu.matmul %7, %8, %cst_8 {dimension_numbers = #tpu.dot_dimension_numbers<[1], [0], [0], [1], [0, 0, 1, 1], [], []>} : vector<16x32xf32>, vector<32x32xf32>, vector<16x32xf32> -> vector<16x32xf32>
    %c0_9 = arith.constant 0 : index
    %c0_10 = arith.constant 0 : index
    %10 = vector.load %arg5[%c0_9, %c0_10] : memref<1x32xf32, #tpu.memory_space<vmem>>, vector<1x32xf32>
    %11 = vector.broadcast %10 : vector<1x32xf32> to vector<16x32xf32>
    %12 = arith.addf %9, %11 : vector<16x32xf32>
    %c0_11 = arith.constant 0 : index
    %c0_12 = arith.constant 0 : index
    %13 = vector.load %arg6[%c0_11, %c0_12] : memref<16x32xf32, #tpu.memory_space<vmem>>, vector<16x32xf32>
    tpu.vector_store %arg6[%c0_11, %c0_12], %12 {strides = array<i32>} : memref<16x32xf32, #tpu.memory_space<vmem>>, vector<16x32xf32>,
    return
  }
  func.func @transform_0(%arg0: i32) -> (i32, i32) {
    %c0_i32 = arith.constant 0 : i32
    %c0_i32_0 = arith.constant 0 : i32
    return %arg0, %c0_i32 : i32, i32
  }
  func.func @transform_1(%arg0: i32) -> (i32, i32) {
    %c0_i32 = arith.constant 0 : i32
    %c0_i32_0 = arith.constant 0 : i32
    %c0_i32_1 = arith.constant 0 : i32
    return %c0_i32, %c0_i32_0 : i32, i32
  }
  func.func @transform_2(%arg0: i32) -> (i32, i32) {
    %c0_i32 = arith.constant 0 : i32
    %c0_i32_0 = arith.constant 0 : i32
    %c0_i32_1 = arith.constant 0 : i32
    return %c0_i32, %c0_i32_0 : i32, i32
  }
  func.func @transform_3(%arg0: i32) -> (i32, i32) {
    %c0_i32 = arith.constant 0 : i32
    %c0_i32_0 = arith.constant 0 : i32
    %c0_i32_1 = arith.constant 0 : i32
    return %c0_i32, %c0_i32_0 : i32, i32
  }
  func.func @transform_4(%arg0: i32) -> (i32, i32) {
    %c0_i32 = arith.constant 0 : i32
    %c0_i32_0 = arith.constant 0 : i32
    %c0_i32_1 = arith.constant 0 : i32
    return %c0_i32, %c0_i32_0 : i32, i32
  }
  func.func @transform_5(%arg0: i32) -> (i32, i32) {
    %c0_i32 = arith.constant 0 : i32
    %c0_i32_0 = arith.constant 0 : i32
    return %arg0, %c0_i32 : i32, i32
  }
}

</mosaic_0001>

<bundles_post_ra>
// kernel: tpu_custom_call.1
= control target key start
LH: loop header
LB: loop body
LE: loop exit
PB: predicated region body
PF: predicated region fallthrough
CT: control target
= control target key end

     0   :  { %10 = vsyncpa [#allocation3], 0  ;;  %s363_s0 = inlined_call_operand.hbm [shape: f32[16,32], index: 0, kind: input, shape index: {}]   ;;  %s364_s1 = inlined_call_operand.hbm [shape: f32[32,32], index: 1, kind: input, shape index: {}]   ;;  %s365_s2 = inlined_call_operand.vmem [shape: f32[1,32], index: 2, kind: input, shape index: {}]   ;;  %s366_s3 = inlined_call_operand.hbm [shape: f32[32,32], index: 3, kind: input, shape index: {}]   ;;  %s367_s4 = inlined_call_operand.vmem [shape: f32[1,32], index: 4, kind: input, shape index: {}]   ;;  %s368_s5 = inlined_call_operand.hbm [shape: f32[16,32], index: 5, kind: output, shape index: {}]  }
   0x1   :  { %11 = vsyncpa [#allocation6], 0 }
   0x2   :  { %12 = vsyncpa [#allocation4], 0  ;;  %s30_s20 = sshll.u32 %s364_s1, 4  ;;  %s291_s21 = smov [#allocation5]   ;;  %s31_s20 = int_to_ptr.hbm [resolvable:$true] %s30_s20 }
   0x3   :  { %s32_s22 = sshll.u32 %s291_s21, 4  ;;  %s17_s25 = sshll.u32 %s363_s0, 4  ;;  %s33_s22 = int_to_ptr.vmem [resolvable:$true] %s32_s22  ;;  %s18_s25 = int_to_ptr.hbm [resolvable:$true] %s17_s25 }
   0x4   :  { %s292_s26 = smov 128   ;;  %s293_s27 = smov 8  }
   0x5   :  { %38 = dma.hbm_to_vmem [thread:$0]  %s31_s20, 512, %s33_s22, [#allocation6], %s292_s26, %s292_s26, %s293_s27  }
   0x6   :  { %s294_s28 = smov [#allocation2]   ;;  %s45_s1 = sshll.u32 %s366_s3, 4  ;;  %s46_s1 = int_to_ptr.hbm [resolvable:$true] %s45_s1 }
   0x7   :  { %s19_s29 = sshll.u32 %s294_s28, 4  ;;  %s295_s0 = smov [#allocation7]   ;;  %s20_s29 = int_to_ptr.vmem [resolvable:$true] %s19_s29 }
   0x8   :  { %25 = dma.hbm_to_vmem [thread:$0]  %s18_s25, 256, %s20_s29, [#allocation3], %s292_s26, %s292_s26, %s293_s27  }
   0x9   :  { %s47_s7 = sshll.u32 %s295_s0, 4  ;;  %s48_s7 = int_to_ptr.vmem [resolvable:$true] %s47_s7 }
   0xa   :  { %53 = dma.hbm_to_vmem [thread:$0]  %s46_s1, 512, %s48_s7, [#allocation6], %s292_s26, %s292_s26, %s293_s27  }
   0xb   :  { %285 = dma.done.wait [#allocation3], 256  }
   0xc   :  { %286 = vsyncadd [#allocation3], 4294967040 }
   0xd   :  { %287 = dma.done.wait [#allocation6], 1024  }
   0xe   :  { %288 = vsyncadd [#allocation6], 4294966272  ;;  %v73_v0 = vld [vmem:[#allocation5 + $0x18] sm:$0xff]  ;;  %v72_v1 = vld [vmem:[#allocation5 + $0x10] sm:$0xff]  ;;  %vm78_vm0 = vcmask 261120   ;;  %s296_s11 = smov [#allocation8]  }
   0xf   :  { %173 = vmatpush.msra.mxu2 %v73_v0  ;;  %97 = vmatpush.msra.mxu0 %v73_v0  ;;  %v71_v2 = vld [vmem:[#allocation5 + $0x8] sm:$0xff]  ;;  %v113_v3 = vld [vmem:[#allocation7 + $0x18] sm:$0xff]  ;;  %v70_v4 = vld [vmem:[#allocation5] sm:$0xff]  ;;  %s155_s14 = sshll.u32 %s368_s5, 4  ;;  %s156_s14 = int_to_ptr.hbm [resolvable:$true] %s155_s14 }
  0x10   :  { %177 = vmatpush.msra.mxu3 %v113_v3  ;;  %136 = vmatpush.msra.mxu1 %v113_v3  ;;  %v69_v5 = vld [vmem:[#allocation2 + $0x8] sm:$0xff]  ;;  %v68_v6 = vld [vmem:[#allocation2] sm:$0xff]  ;;  %v111_v8 = vld [vmem:[#allocation7 + $0x8] sm:$0xff] }
  0x11   :  { %174 = vmatpush.msra.mxu2 %v72_v1  ;;  %98 = vmatpush.msra.mxu0 %v72_v1  ;;  %v112_v7 = vld [vmem:[#allocation7 + $0x10] sm:$0xff]  ;;  %v110_v9 = vld [vmem:[#allocation7] sm:$0xff] }
  0x12   :  { %178 = vmatpush.msra.mxu3 %v112_v7  ;;  %137 = vmatpush.msra.mxu1 %v112_v7  ;;  %v187_v10 = vld [vmem:[%s365_s2] ss:$0 sm:$0xff]  ;;  %s153_s2 = sshll.u32 %s296_s11, 4  ;;  %s154_s2 = int_to_ptr.vmem [resolvable:$true] %s153_s2 }
  0x13   :  { %175 = vmatpush.msra.mxu2 %v71_v2  ;;  %99 = vmatpush.msra.mxu0 %v71_v2  ;;  %v188_v17 = vld [vmem:[%s367_s4] ss:$0 sm:$0xff] }
  0x14   :  { %179 = vmatpush.msra.mxu3 %v111_v8  ;;  %138 = vmatpush.msra.mxu1 %v111_v8 }
  0x15   :  { %176 = vmatpush.msra.mxu2 %v70_v4  ;;  %100 = vmatpush.msra.mxu0 %v70_v4 }
  0x16   :  { %170 = vmatmul.msk.f32.vlgmr.msra.gmra.mxu2 %vm78_vm0, %v69_v5  ;;  %169 = vmatmul.msk.f32.vlgmr.msra.gmra.mxu0 %vm78_vm0, %v68_v6 }
  0x17   :  { %180 = vmatpush.msra.mxu3 %v110_v9  ;;  %139 = vmatpush.msra.mxu1 %v110_v9 }
  0x93   :  { %v102_v11 = vpop.f32.mrf.mxu0 }
  0x94   :  { %v103_v12 = vadd.f32 %v187_v10, %v102_v11 }
  0x96   :  { %v108_v13 = vmax.f32 %v103_v12, 0.0 }
  0x98   :  { %171 = vmatmul.msk.f32.vlgmr.msra.gmra.mxu1 %vm78_vm0, %v108_v13 }
  0x99   :  { %v105_v14 = vpop.f32.mrf.mxu2 }
  0x9a   :  { %v106_v15 = vadd.f32 %v187_v10, %v105_v14 }
  0x9c   :  { %v109_v16 = vmax.f32 %v106_v15, 0.0 }
  0x9e   :  { %172 = vmatmul.msk.f32.vlgmr.msra.gmra.mxu3 %vm78_vm0, %v109_v16 }
 0x115   :  { %v141_v18 = vpop.f32.mrf.mxu1 }
 0x116   :  { %v142_v19 = vadd.f32 %v188_v17, %v141_v18 }
 0x118   :  { %147 = vst.msk [vmem:[#allocation8] sm:$0xff] %vm78_vm0, %v142_v19 }
 0x121   :  { %v144_v20 = vpop.f32.mrf.mxu3 }
 0x122   :  { %v145_v21 = vadd.f32 %v188_v17, %v144_v20 }
 0x124   :  { %148 = vst.msk [vmem:[#allocation8 + $0x8] sm:$0xff] %vm78_vm0, %v145_v21 }
 0x125   :  { %161 = dma.vmem_to_hbm [thread:$0]  %s154_s2, 256, %s156_s14, [#allocation4], %s292_s26, %s292_s26, %s293_s27  }
 0x126   :  { %289 = dma.done.wait [#allocation4], 256  }
 0x127   :  { %290 = vsyncadd [#allocation4], 4294967040 }
 0x128   :  { %166 = vsyncpa [#allocation3], 1 }
 0x129   :  { %167 = vsyncpa [#allocation6], 1 }
 0x12a   :  { %168 = vsyncpa [#allocation4], 1 }

</bundles_post_ra>
